<compile_context>
chip_gen: v7x
topology: tpu7x:2x2x1
jax: 0.10.0
libtpu: 0.0.40
codegen_flags: <defaults>
</compile_context>

<pallas_src>
import functools

import jax
import jax.numpy as jnp
import numpy as np
from jax import lax
from jax.experimental import pallas as pl
from jax.experimental.pallas import tpu as pltpu

_LANES = 128
_NEG_INF = -1e30  # bias for padded gen columns -> exp underflows to exactly 0


def _round_up(x, m):
    return (x + m - 1) // m * m


def _pointer_gen_kernel(vocab_pad, use_fixed,
                        x_ref, att_w_ref, att_ids_ref, w_ref, b_ref, *rest):
    if use_fixed:
        cp_ref, word_probs_ref, prob_ptr_ref = rest
    else:
        word_probs_ref, prob_ptr_ref = rest

    bs, ext_v_pad = word_probs_ref.shape
    seq_len = att_w_ref.shape[1]

    # ---- fused Linear on the MXU: gen logits (+ copy-gate logit column) --------
    logits = jnp.dot(x_ref[...], w_ref[...],
                     preferred_element_type=jnp.float32) + b_ref[...]
    gen_logits = logits[:, :vocab_pad]                # padded cols carry -1e30 bias
    m = jnp.max(gen_logits, axis=-1, keepdims=True)
    e = jnp.exp(gen_logits - m)                       # padded cols underflow to 0
    denom = jnp.sum(e, axis=-1, keepdims=True)
    # Exact reciprocal on [bs, 1] (cheap); approx EUP reciprocal was not accurate
    # enough for the verification tolerance.
    gen_probs = e * (1.0 / denom)

    if use_fixed:
        prob_ptr = jnp.full((bs, 1), cp_ref[0, 0], dtype=jnp.float32)
    else:
        gate_logit = logits[:, vocab_pad:vocab_pad + 1]   # b_cg already folded in
        prob_ptr = 1.0 / (1.0 + jnp.exp(-gate_logit))     # exact sigmoid, [bs, 1]
    prob_gen = 1.0 - prob_ptr
    gen_scaled = prob_gen * gen_probs                     # [bs, vocab_pad]

    # ---- scatter_add_(1, att_word_ids, prob_ptr * att_weights) -----------------
    # fori_loop over seq positions, one [bs, ext_v_pad] accumulator (no 3-D temps).
    att_probs = prob_ptr * att_w_ref[...]                 # [bs, S]
    ids = att_ids_ref[...]                                # [bs, S] int32
    lane_iota = lax.broadcasted_iota(jnp.int32, (bs, ext_v_pad), 1)
    s_iota = lax.broadcasted_iota(jnp.int32, (bs, seq_len), 1)

    def body(s, acc):
        sel = s_iota == s                                  # pick column s (static shapes)
        id_s = jnp.sum(jnp.where(sel, ids, 0), axis=-1, keepdims=True)        # [bs,1]
        p_s = jnp.sum(jnp.where(sel, att_probs, 0.0), axis=-1, keepdims=True)  # [bs,1]
        return acc + jnp.where(lane_iota == id_s, p_s, 0.0)

    acc = lax.fori_loop(0, seq_len, body,
                        jnp.zeros((bs, ext_v_pad), jnp.float32))

    # ---- lane-dense stores straight into the padded output ref -----------------
    word_probs_ref[:, :vocab_pad] = acc[:, :vocab_pad] + gen_scaled
    if ext_v_pad > vocab_pad:
        word_probs_ref[:, vocab_pad:] = acc[:, vocab_pad:]
    prob_ptr_ref[...] = prob_ptr


def pointer_gen_forward(embds, dec_out, att_weights, att_word_ids, params,
                        ext_vocab_size, copy_prob=None, *, bs_tile=8):
    """Returns (word_probs [bs, ext_vocab_size], prob_ptr [bs])."""
    w_gen, b_gen, w_cg_dec, w_cg_emb, b_cg = params
    f32 = jnp.float32
    bs, dec_dim = dec_out.shape
    emb_dim = embds.shape[1]
    seq_len = att_weights.shape[1]
    vocab = w_gen.shape[1]
    use_fixed = copy_prob is not None

    vocab_pad = _round_up(vocab, _LANES)
    ext_v_pad = _round_up(max(ext_vocab_size, vocab_pad), _LANES)
    bs_pad = _round_up(bs, bs_tile)

    # ---- pack weights (in real use this is done once at parameter-load time) ---
    if use_fixed:
        # Gate weights are unused: do not ship them to the device at all.
        x = dec_out.astype(f32)
        k_dim, n_dim = dec_dim, vocab_pad
        w_big = jnp.zeros((k_dim, n_dim), f32).at[:, :vocab].set(w_gen)
        b_big = jnp.full((1, n_dim), _NEG_INF, f32).at[:, :vocab].set(b_gen)
    else:
        # Fold copy_gate(cat(dec_out, embds)) into one extra 128-lane block of the
        # gen matmul (gate logit lives at lane `vocab_pad`).
        x = jnp.concatenate([dec_out, embds], axis=-1).astype(f32)
        k_dim, n_dim = dec_dim + emb_dim, vocab_pad + _LANES
        w_big = jnp.zeros((k_dim, n_dim), f32)
        w_big = w_big.at[:dec_dim, :vocab].set(w_gen)
        w_big = w_big.at[:dec_dim, vocab_pad].set(w_cg_dec[0])
        w_big = w_big.at[dec_dim:, vocab_pad].set(w_cg_emb[0])
        b_big = jnp.zeros((1, n_dim), f32)
        b_big = b_big.at[:, vocab:vocab_pad].set(_NEG_INF)
        b_big = b_big.at[:, :vocab].set(b_gen)
        b_big = b_big.at[:, vocab_pad].set(b_cg[0, 0])

    att_w = att_weights.astype(f32)
    att_ids = att_word_ids.astype(jnp.int32)
    if bs_pad > bs:
        row_pad = ((0, bs_pad - bs), (0, 0))
        x = jnp.pad(x, row_pad)
        att_w = jnp.pad(att_w, row_pad)
        att_ids = jnp.pad(att_ids, row_pad)

    n_tiles = bs_pad // bs_tile
    kernel = functools.partial(_pointer_gen_kernel, vocab_pad, use_fixed)

    def batch_spec(cols):
        return pl.BlockSpec((bs_tile, cols), lambda i: (i, 0))

    def resident_spec(shape):   # constant block index -> stays resident across grid
        return pl.BlockSpec(shape, lambda i: (0, 0))

    in_specs = [
        batch_spec(k_dim),                 # x = dec_out (+ embds)
        batch_spec(seq_len),               # att_weights
        batch_spec(seq_len),               # att_word_ids
        resident_spec((k_dim, n_dim)),     # packed weights
        resident_spec((1, n_dim)),         # packed bias
    ]
    inputs = [x, att_w, att_ids, w_big, b_big]
    if use_fixed:
        in_specs.append(pl.BlockSpec(memory_space=pltpu.MemorySpace.SMEM))
        inputs.append(jnp.full((1, 1), copy_prob, f32))

    word_probs_pad, prob_ptr_pad = pl.pallas_call(
        kernel,
        grid=(n_tiles,),
        in_specs=in_specs,
        out_specs=(pl.BlockSpec((bs_tile, ext_v_pad), lambda i: (i, 0)),
                   pl.BlockSpec((bs_tile, 1), lambda i: (i, 0))),
        out_shape=(jax.ShapeDtypeStruct((bs_pad, ext_v_pad), f32),
                   jax.ShapeDtypeStruct((bs_pad, 1), f32)),
        compiler_params=pltpu.CompilerParams(
            dimension_semantics=("parallel",),          # megacore sharding
            vmem_limit_bytes=32 * 1024 * 1024),         # v7x-safe explicit budget
    )(*inputs)

    return word_probs_pad[:bs, :ext_vocab_size], prob_ptr_pad[:bs, 0]


def pointer_gen_reference(embds, dec_out, att_weights, att_word_ids, params,
                          ext_vocab_size, copy_prob=None):
    """Pure-JAX mirror of the PyTorch forward (for verification)."""
    w_gen, b_gen, w_cg_dec, w_cg_emb, b_cg = params
    bs = dec_out.shape[0]
    gen_probs = jax.nn.softmax(dec_out @ w_gen + b_gen, axis=-1)
    vocab = gen_probs.shape[-1]
    if copy_prob is None:
        gate = (jnp.sum(dec_out * w_cg_dec, -1, keepdims=True)
                + jnp.sum(embds * w_cg_emb, -1, keepdims=True) + b_cg)
        prob_ptr = 1.0 / (1.0 + jnp.exp(-gate))
    else:
        prob_ptr = jnp.full((bs, 1), copy_prob, jnp.float32)
    prob_gen = 1.0 - prob_ptr
    word_probs = jnp.zeros((bs, ext_vocab_size), jnp.float32)
    word_probs = word_probs.at[:, :vocab].set(prob_gen * gen_probs)
    att_probs = prob_ptr * att_weights
    word_probs = word_probs.at[jnp.arange(bs)[:, None], att_word_ids].add(att_probs)
    return word_probs, prob_ptr[:, 0]


if __name__ == "__main__":
    # bs=8 fills the f32 sublanes; vocab deliberately NOT lane-aligned to exercise
    # the padding path (vocab 120 -> 128, ext vocab 200 -> 256).
    bs, emb_dim, dec_out_dim = 8, 32, 64
    inp_seq_len, vocab_size, ext_vocab_size = 8, 120, 200

    key = jax.random.PRNGKey(0)
    k = jax.random.split(key, 9)

    embds = jax.random.normal(k[0], (bs, emb_dim), jnp.float32)
    dec_out = jax.random.normal(k[1], (bs, dec_out_dim), jnp.float32)
    att_weights = jax.nn.softmax(
        jax.random.normal(k[2], (bs, inp_seq_len), jnp.float32), axis=-1)
    att_word_ids = jax.random.randint(
        k[3], (bs, inp_seq_len), 0, ext_vocab_size, jnp.int32)

    w_gen = 0.1 * jax.random.normal(k[4], (dec_out_dim, vocab_size), jnp.float32)
    b_gen = 0.1 * jax.random.normal(k[5], (1, vocab_size), jnp.float32)
    w_cg_dec = 0.1 * jax.random.normal(k[6], (1, dec_out_dim), jnp.float32)
    w_cg_emb = 0.1 * jax.random.normal(k[7], (1, emb_dim), jnp.float32)
    b_cg = 0.1 * jax.random.normal(k[8], (1, 1), jnp.float32)
    params = (w_gen, b_gen, w_cg_dec, w_cg_emb, b_cg)

    # ----- learned copy gate (copy_prob=None) -----
    wp, pp = pointer_gen_forward(embds, dec_out, att_weights, att_word_ids,
                                 params, ext_vocab_size, copy_prob=None)
    jax.block_until_ready((wp, pp))
    ref_wp, ref_pp = pointer_gen_reference(embds, dec_out, att_weights,
                                           att_word_ids, params, ext_vocab_size,
                                           copy_prob=None)
    np.testing.assert_allclose(np.asarray(wp), np.asarray(ref_wp),
                               rtol=1e-4, atol=1e-5)
    np.testing.assert_allclose(np.asarray(pp), np.asarray(ref_pp),
                               rtol=1e-5, atol=1e-5)
    np.testing.assert_allclose(np.asarray(wp).sum(-1), np.ones(bs),
                               rtol=1e-4, atol=1e-4)

    # ----- fixed copy probability path (SMEM scalar, no gate weights shipped) ---
    wp_f, pp_f = pointer_gen_forward(embds, dec_out, att_weights, att_word_ids,
                                     params, ext_vocab_size, copy_prob=0.25)
    jax.block_until_ready((wp_f, pp_f))
    ref_wp_f, ref_pp_f = pointer_gen_reference(embds, dec_out, att_weights,
                                               att_word_ids, params,
                                               ext_vocab_size, copy_prob=0.25)
    np.testing.assert_allclose(np.asarray(wp_f), np.asarray(ref_wp_f),
                               rtol=1e-4, atol=1e-5)
    np.testing.assert_allclose(np.asarray(pp_f), np.asarray(ref_pp_f),
                               rtol=1e-5, atol=1e-5)
    np.testing.assert_allclose(np.asarray(wp_f).sum(-1), np.ones(bs),
                               rtol=1e-4, atol=1e-4)

    print("KERNEL_OK")
</pallas_src>

<mosaic_0001>
module attributes {stable_mosaic.version = 11 : i64} {
  func.func @_pointer_gen_kernel(%arg0: i32, %arg1: memref<8x96xf32, #tpu.memory_space<vmem>>, %arg2: memref<8x8xf32, #tpu.memory_space<vmem>>, %arg3: memref<8x8xi32, #tpu.memory_space<vmem>>, %arg4: memref<96x256xf32, #tpu.memory_space<vmem>>, %arg5: memref<1x256xf32, #tpu.memory_space<vmem>>, %arg6: memref<8x256xf32, #tpu.memory_space<vmem>>, %arg7: memref<8x1xf32, #tpu.memory_space<vmem>>) attributes {dimension_semantics = [#tpu.dimension_semantics<parallel>], iteration_bounds = array<i64: 1>, scalar_prefetch = 0 : i64, scratch_operands = 0 : i64, tpu.core_type = #tpu.core_type<tc>, window_params = [{transform_indices = @transform_0, window_bounds = array<i64: 8, 96>}, {transform_indices = @transform_1, window_bounds = array<i64: 8, 8>}, {transform_indices = @transform_2, window_bounds = array<i64: 8, 8>}, {pipeline_mode = #tpu.pipeline_mode<synchronous>, transform_indices = @transform_3, window_bounds = array<i64: 96, 256>}, {pipeline_mode = #tpu.pipeline_mode<synchronous>, transform_indices = @transform_4, window_bounds = array<i64: 1, 256>}, {transform_indices = @transform_5, window_bounds = array<i64: 8, 256>}, {transform_indices = @transform_6, window_bounds = array<i64: 8, 1>}]} {
    %c0 = arith.constant 0 : index
    %c0_0 = arith.constant 0 : index
    %0 = vector.load %arg1[%c0, %c0_0] : memref<8x96xf32, #tpu.memory_space<vmem>>, vector<8x96xf32>
    %c0_1 = arith.constant 0 : index
    %c0_2 = arith.constant 0 : index
    %1 = vector.load %arg4[%c0_1, %c0_2] : memref<96x256xf32, #tpu.memory_space<vmem>>, vector<96x256xf32>
    %cst = arith.constant dense<0.000000e+00> : vector<8x256xf32>
    %2 = tpu.matmul %0, %1, %cst {dimension_numbers = #tpu.dot_dimension_numbers<[1], [0], [0], [1], [0, 0, 1, 1], [], []>} : vector<8x96xf32>, vector<96x256xf32>, vector<8x256xf32> -> vector<8x256xf32>
    %c0_3 = arith.constant 0 : index
    %c0_4 = arith.constant 0 : index
    %3 = vector.load %arg5[%c0_3, %c0_4] : memref<1x256xf32, #tpu.memory_space<vmem>>, vector<1x256xf32>
    %4 = vector.broadcast %3 : vector<1x256xf32> to vector<8x256xf32>
    %5 = arith.addf %2, %4 : vector<8x256xf32>
    %6 = vector.extract_strided_slice %5 {offsets = [0, 0], sizes = [8, 128], strides = [1, 1]} : vector<8x256xf32> to vector<8x128xf32>
    %cst_5 = arith.constant dense<0xFF800000> : vector<8xf32>
    %7 = vector.multi_reduction <maximumf>, %6, %cst_5 [1] : vector<8x128xf32> to vector<8xf32>
    %8 = vector.shape_cast %7 : vector<8xf32> to vector<8x1xf32>
    %9 = vector.broadcast %8 : vector<8x1xf32> to vector<8x128xf32>
    %10 = arith.subf %6, %9 : vector<8x128xf32>
    %11 = math.exp %10 : vector<8x128xf32>
    %cst_6 = arith.constant dense<0.000000e+00> : vector<8xf32>
    %12 = vector.multi_reduction <add>, %11, %cst_6 [1] : vector<8x128xf32> to vector<8xf32>
    %13 = vector.shape_cast %12 : vector<8xf32> to vector<8x1xf32>
    %cst_7 = arith.constant 1.000000e+00 : f32
    %14 = vector.broadcast %cst_7 : f32 to vector<8x1xf32>
    %15 = arith.divf %14, %13 : vector<8x1xf32>
    %16 = vector.broadcast %15 : vector<8x1xf32> to vector<8x128xf32>
    %17 = arith.mulf %11, %16 : vector<8x128xf32>
    %18 = vector.extract_strided_slice %5 {offsets = [0, 128], sizes = [8, 1], strides = [1, 1]} : vector<8x256xf32> to vector<8x1xf32>
    %cst_8 = arith.constant 0.000000e+00 : f32
    %19 = vector.broadcast %cst_8 : f32 to vector<8x1xf32>
    %20 = arith.subf %19, %18 : vector<8x1xf32>
    %21 = math.exp %20 : vector<8x1xf32>
    %cst_9 = arith.constant 1.000000e+00 : f32
    %22 = vector.broadcast %cst_9 : f32 to vector<8x1xf32>
    %23 = arith.addf %22, %21 : vector<8x1xf32>
    %cst_10 = arith.constant 1.000000e+00 : f32
    %24 = vector.broadcast %cst_10 : f32 to vector<8x1xf32>
    %25 = arith.divf %24, %23 : vector<8x1xf32>
    %cst_11 = arith.constant 1.000000e+00 : f32
    %26 = vector.broadcast %cst_11 : f32 to vector<8x1xf32>
    %27 = arith.subf %26, %25 : vector<8x1xf32>
    %28 = vector.broadcast %27 : vector<8x1xf32> to vector<8x128xf32>
    %29 = arith.mulf %28, %17 : vector<8x128xf32>
    %c0_12 = arith.constant 0 : index
    %c0_13 = arith.constant 0 : index
    %30 = vector.load %arg2[%c0_12, %c0_13] : memref<8x8xf32, #tpu.memory_space<vmem>>, vector<8x8xf32>
    %31 = vector.broadcast %25 : vector<8x1xf32> to vector<8x8xf32>
    %32 = arith.mulf %31, %30 : vector<8x8xf32>
    %c0_14 = arith.constant 0 : index
    %c0_15 = arith.constant 0 : index
    %33 = vector.load %arg3[%c0_14, %c0_15] : memref<8x8xi32, #tpu.memory_space<vmem>>, vector<8x8xi32>
    %34 = tpu.iota {dimensions = array<i32: 1>} : vector<8x256xi32>
    %35 = tpu.iota {dimensions = array<i32: 1>} : vector<8x8xi32>
    %cst_16 = arith.constant 0.000000e+00 : f32
    %36 = vector.broadcast %cst_16 : f32 to vector<8x256xf32>
    %c0_i32 = arith.constant 0 : i32
    %c8_i32 = arith.constant 8 : i32
    %37 = arith.addi %c0_i32, %c8_i32 : i32
    %c1_i32 = arith.constant 1 : i32
    %38 = scf.for %arg8 = %c0_i32 to %37 step %c1_i32 iter_args(%arg9 = %36) -> (vector<8x256xf32>)  : i32 {
      %45 = vector.broadcast %arg8 : i32 to vector<8x8xi32>
      %46 = arith.cmpi eq, %35, %45 : vector<8x8xi32>
      %c0_i32_23 = arith.constant 0 : i32
      %47 = vector.broadcast %c0_i32_23 : i32 to vector<8x8xi32>
      %48 = arith.select %46, %33, %47 : vector<8x8xi1>, vector<8x8xi32>
      %cst_24 = arith.constant dense<0> : vector<8xi32>
      %49 = vector.multi_reduction <add>, %48, %cst_24 [1] : vector<8x8xi32> to vector<8xi32>
      %50 = vector.shape_cast %49 : vector<8xi32> to vector<8x1xi32>
      %cst_25 = arith.constant 0.000000e+00 : f32
      %51 = vector.broadcast %cst_25 : f32 to vector<8x8xf32>
      %52 = arith.select %46, %32, %51 : vector<8x8xi1>, vector<8x8xf32>
      %cst_26 = arith.constant dense<0.000000e+00> : vector<8xf32>
      %53 = vector.multi_reduction <add>, %52, %cst_26 [1] : vector<8x8xf32> to vector<8xf32>
      %54 = vector.shape_cast %53 : vector<8xf32> to vector<8x1xf32>
      %55 = vector.broadcast %50 : vector<8x1xi32> to vector<8x256xi32>
      %56 = arith.cmpi eq, %34, %55 : vector<8x256xi32>
      %cst_27 = arith.constant 0.000000e+00 : f32
      %57 = vector.shape_cast %54 : vector<8x1xf32> to vector<8x1xf32>
      %58 = vector.broadcast %57 : vector<8x1xf32> to vector<8x256xf32>
      %59 = vector.broadcast %cst_27 : f32 to vector<8x256xf32>
      %60 = arith.select %56, %58, %59 : vector<8x256xi1>, vector<8x256xf32>
      %61 = arith.addf %arg9, %60 : vector<8x256xf32>
      scf.yield %61 : vector<8x256xf32>
    }
    %c8_i32_17 = arith.constant 8 : i32
    %39 = vector.extract_strided_slice %38 {offsets = [0, 0], sizes = [8, 128], strides = [1, 1]} : vector<8x256xf32> to vector<8x128xf32>
    %40 = arith.addf %39, %29 : vector<8x128xf32>
    %c0_18 = arith.constant 0 : index
    %c0_19 = arith.constant 0 : index
    %41 = vector.load %arg6[%c0_18, %c0_19] : memref<8x256xf32, #tpu.memory_space<vmem>>, vector<8x128xf32>
    tpu.vector_store %arg6[%c0_18, %c0_19], %40 {strides = array<i32>} : memref<8x256xf32, #tpu.memory_space<vmem>>, vector<8x128xf32>,
    %42 = vector.extract_strided_slice %38 {offsets = [0, 128], sizes = [8, 128], strides = [1, 1]} : vector<8x256xf32> to vector<8x128xf32>
    %c0_20 = arith.constant 0 : index
    %c128 = arith.constant 128 : index
    %43 = vector.load %arg6[%c0_20, %c128] : memref<8x256xf32, #tpu.memory_space<vmem>>, vector<8x128xf32>
    tpu.vector_store %arg6[%c0_20, %c128], %42 {strides = array<i32>} : memref<8x256xf32, #tpu.memory_space<vmem>>, vector<8x128xf32>,
    %c0_21 = arith.constant 0 : index
    %c0_22 = arith.constant 0 : index
    %44 = vector.load %arg7[%c0_21, %c0_22] : memref<8x1xf32, #tpu.memory_space<vmem>>, vector<8x1xf32>
    tpu.vector_store %arg7[%c0_21, %c0_22], %25 {strides = array<i32>} : memref<8x1xf32, #tpu.memory_space<vmem>>, vector<8x1xf32>,
    return
  }
  func.func @transform_0(%arg0: i32) -> (i32, i32) {
    %c0_i32 = arith.constant 0 : i32
    %c0_i32_0 = arith.constant 0 : i32
    return %arg0, %c0_i32 : i32, i32
  }
  func.func @transform_1(%arg0: i32) -> (i32, i32) {
    %c0_i32 = arith.constant 0 : i32
    %c0_i32_0 = arith.constant 0 : i32
    return %arg0, %c0_i32 : i32, i32
  }
  func.func @transform_2(%arg0: i32) -> (i32, i32) {
    %c0_i32 = arith.constant 0 : i32
    %c0_i32_0 = arith.constant 0 : i32
    return %arg0, %c0_i32 : i32, i32
  }
  func.func @transform_3(%arg0: i32) -> (i32, i32) {
    %c0_i32 = arith.constant 0 : i32
    %c0_i32_0 = arith.constant 0 : i32
    %c0_i32_1 = arith.constant 0 : i32
    return %c0_i32, %c0_i32_0 : i32, i32
  }
  func.func @transform_4(%arg0: i32) -> (i32, i32) {
    %c0_i32 = arith.constant 0 : i32
    %c0_i32_0 = arith.constant 0 : i32
    %c0_i32_1 = arith.constant 0 : i32
    return %c0_i32, %c0_i32_0 : i32, i32
  }
  func.func @transform_5(%arg0: i32) -> (i32, i32) {
    %c0_i32 = arith.constant 0 : i32
    %c0_i32_0 = arith.constant 0 : i32
    return %arg0, %c0_i32 : i32, i32
  }
  func.func @transform_6(%arg0: i32) -> (i32, i32) {
    %c0_i32 = arith.constant 0 : i32
    %c0_i32_0 = arith.constant 0 : i32
    return %arg0, %c0_i32 : i32, i32
  }
}

</mosaic_0001>

<bundles_post_ra>
// kernel: tpu_custom_call.1
= control target key start
LH: loop header
LB: loop body
LE: loop exit
PB: predicated region body
PF: predicated region fallthrough
CT: control target
= control target key end

     0   :  { %12 = vsyncpa [#allocation3], 0  ;;  %s642_s0 = inlined_call_operand.hbm [shape: f32[8,96], index: 0, kind: input, shape index: {}]   ;;  %s643_s1 = inlined_call_operand.hbm [shape: f32[8,8], index: 1, kind: input, shape index: {}]   ;;  %s644_s2 = inlined_call_operand.hbm [shape: s32[8,8], index: 2, kind: input, shape index: {}]   ;;  %s645_s3 = inlined_call_operand.hbm [shape: f32[96,256], index: 3, kind: input, shape index: {}]   ;;  %s646_s4 = inlined_call_operand.vmem [shape: f32[1,256], index: 4, kind: input, shape index: {}]   ;;  %s647_s5 = inlined_call_operand.hbm [shape: f32[8,256], index: 5, kind: output, shape index: {0}]   ;;  %s648_s6 = inlined_call_operand.vmem [shape: f32[8,1], index: 6, kind: output, shape index: {1}]  }
   0x1   :  { %13 = vsyncpa [#allocation6], 0 }
   0x2   :  { %14 = vsyncpa [#allocation9], 0 }
   0x3   :  { %15 = vsyncpa [#allocation4], 0  ;;  %s500_s21 = smov [#allocation5]   ;;  %s501_s23 = smov [#allocation2]  }
   0x4   :  { %s32_s22 = sshll.u32 %s500_s21, 4  ;;  %s22_s24 = sshll.u32 %s501_s23, 4  ;;  %s33_s22 = int_to_ptr.vmem [resolvable:$true] %s32_s22  ;;  %s23_s24 = int_to_ptr.vmem [resolvable:$true] %s22_s24 }
   0x5   :  { %s358_s27 = scalar_lea.hbm %s643_s1, 128 }
   0x6   :  { %p359_p0 = scmp.ne.s32.totalorder %s643_s1, %s358_s27  ;;  %p362_p1 = scmp.lt.u32.totalorder %s358_s27, %s643_s1 }
   0x8   :  { %p364_p2 = pnand %p362_p1, %p359_p0 }
   0xa   :  { %367 = shalt.err (!%p364_p2)
}
   0xb   :  { %s368_s8 = scalar_lea.vmem %s33_s22, 128  ;;  %p373_p4 = scmp.lt.s32.totalorder %s33_s22, %s33_s22 }
   0xc   :  { %p369_p3 = scmp.ne.s32.totalorder %s33_s22, %s368_s8  ;;  %p374_p5 = scmp.lt.s32.totalorder %s368_s8, %s368_s8 }
   0xe   :  { %p375_p6 = por %p374_p5, %p373_p4 }
  0x10   :  { %p376_p7 = pnand %p375_p6, %p369_p3 }
  0x12   :  { %379 = shalt.err (!%p376_p7)
}
  0x13   :  { %35 = dma.hbm_to_vmem [thread:$0]  %s643_s1, 128, %s33_s22, [#allocation6]  }
  0x14   :  { %s380_s13 = scalar_lea.hbm %s642_s0, 128 }
  0x15   :  { %p381_p8 = scmp.ne.s32.totalorder %s642_s0, %s380_s13  ;;  %p384_p9 = scmp.lt.u32.totalorder %s380_s13, %s642_s0 }
  0x17   :  { %p386_p10 = pnand %p384_p9, %p381_p8 }
  0x19   :  { %389 = shalt.err (!%p386_p10)
}
  0x1a   :  { %s390_s18 = scalar_lea.vmem %s23_s24, 128  ;;  %p395_p12 = scmp.lt.s32.totalorder %s23_s24, %s23_s24 }
  0x1b   :  { %p391_p11 = scmp.ne.s32.totalorder %s23_s24, %s390_s18  ;;  %p396_p13 = scmp.lt.s32.totalorder %s390_s18, %s390_s18 }
  0x1d   :  { %p397_p0 = por %p396_p13, %p395_p12 }
  0x1f   :  { %p398_p1 = pnand %p397_p0, %p391_p11 }
  0x21   :  { %401 = shalt.err (!%p398_p1)
}
  0x22   :  { %25 = dma.hbm_to_vmem [thread:$0]  %s642_s0, 128, %s23_s24, [#allocation3]  }
  0x23   :  { %s502_s20 = smov [#allocation7]   ;;  %s503_s22 = smov [#allocation8]  }
  0x24   :  { %s42_s21 = sshll.u32 %s502_s20, 4  ;;  %s51_s23 = sshll.u32 %s503_s22, 4  ;;  %s43_s21 = int_to_ptr.vmem [resolvable:$true] %s42_s21  ;;  %s568_s23 = int_to_ptr.vmem [resolvable:$true] %s51_s23 }
  0x25   :  { %s402_s27 = scalar_lea.hbm %s644_s2, 128 }
  0x26   :  { %p403_p2 = scmp.ne.s32.totalorder %s644_s2, %s402_s27  ;;  %p406_p3 = scmp.lt.u32.totalorder %s402_s27, %s644_s2 }
  0x28   :  { %p408_p4 = pnand %p406_p3, %p403_p2 }
  0x2a   :  { %411 = shalt.err (!%p408_p4)
}
  0x2b   :  { %s412_s0 = scalar_lea.vmem %s43_s21, 128  ;;  %p417_p6 = scmp.lt.s32.totalorder %s43_s21, %s43_s21 }
  0x2c   :  { %p413_p5 = scmp.ne.s32.totalorder %s43_s21, %s412_s0  ;;  %p418_p7 = scmp.lt.s32.totalorder %s412_s0, %s412_s0 }
  0x2e   :  { %p419_p8 = por %p418_p7, %p417_p6 }
  0x30   :  { %p420_p9 = pnand %p419_p8, %p413_p5 }
  0x32   :  { %423 = shalt.err (!%p420_p9)
}
  0x33   :  { %45 = dma.hbm_to_vmem [thread:$0]  %s644_s2, 128, %s43_s21, [#allocation6]  }
  0x34   :  { %s424_s11 = scalar_lea.hbm %s645_s3, 3072 }
  0x35   :  { %p425_p10 = scmp.ne.s32.totalorder %s645_s3, %s424_s11  ;;  %p428_p11 = scmp.lt.u32.totalorder %s424_s11, %s645_s3 }
  0x37   :  { %p430_p12 = pnand %p428_p11, %p425_p10 }
  0x39   :  { %433 = shalt.err (!%p430_p12)
}
  0x3a   :  { %s434_s16 = scalar_lea.vmem %s568_s23, 3072  ;;  %p439_p0 = scmp.lt.s32.totalorder %s568_s23, %s568_s23 }
  0x3b   :  { %p435_p13 = scmp.ne.s32.totalorder %s568_s23, %s434_s16  ;;  %p440_p1 = scmp.lt.s32.totalorder %s434_s16, %s434_s16 }
  0x3d   :  { %p441_p2 = por %p440_p1, %p439_p0 }
  0x3f   :  { %p442_p3 = pnand %p441_p2, %p435_p13 }
  0x41   :  { %445 = shalt.err (!%p442_p3)
}
  0x42   :  { %s504_s2 = smov 256   ;;  %s505_s17 = smov 16  }
  0x43   :  { %57 = dma.hbm_to_vmem [thread:$0]  %s645_s3, 3072, %s568_s23, [#allocation9], %s504_s2, %s504_s2, %s505_s17  }
  0x44   :  { %480 = dma.done.wait [#allocation3], 128  }
  0x45   :  { %481 = vsyncadd [#allocation3], 4294967168 }
  0x46   :  { %482 = dma.done.wait [#allocation6], 256  }
  0x47   :  { %483 = vsyncadd [#allocation6], 4294967040 }
  0x48   :  { %484 = dma.done.wait [#allocation9], 3072  }
  0x49   :  { %485 = vsyncadd [#allocation9], 4294964224  ;;  %v506_v0 = vmov 0.0   ;;  %v599_v1 = vld [vmem:[#allocation7] sm:$0xff]  ;;  %v74_v2 = vld [vmem:[#allocation8 + $0x8] sm:$0xff]  ;;  %vm109_vm0 = vcmask 785408   ;;  %v99_v39 = vlaneseq }
  0x4a   :  { %177 = vmatprep.mubr.f32.mxu0 %v506_v0  ;;  %v76_v3 = vld [vmem:[#allocation8 + $0x18] sm:$0xff]  ;;  %v73_v5 = vld [vmem:[#allocation8] sm:$0xff]  ;;  %v75_v6 = vld [vmem:[#allocation8 + $0x10] sm:$0xff]  ;;  %v507_v42 = vmov 0  }
  0x4b   :  { %v291_v4 = vpack.c.bf16 %v76_v3, %v74_v2  ;;  %v78_v7 = vld [vmem:[#allocation8 + $0x28] sm:$0xff]  ;;  %v293_v8 = vpack.c.bf16 %v75_v6, %v73_v5  ;;  %v80_v9 = vld [vmem:[#allocation8 + $0x38] sm:$0xff]  ;;  %v77_v10 = vld [vmem:[#allocation8 + $0x20] sm:$0xff]  ;;  %v601_v40 = vand.u32 127, %v99_v39  ;;  %348 = vset.pattern.permute.xlu1 %v507_v42  ;;  %349 = vset.pattern.permute.xlu0 %v507_v42  ;;  %v100_v43 = vshrl.u32 %v99_v39, 7 }
  0x4c   :  { %v79_v11 = vld [vmem:[#allocation8 + $0x30] sm:$0xff]  ;;  %v295_v12 = vpack.c.bf16 %v80_v9, %v78_v7  ;;  %v82_v13 = vld [vmem:[#allocation8 + $0x48] sm:$0xff]  ;;  %v84_v14 = vld [vmem:[#allocation8 + $0x58] sm:$0xff]  ;;  %v492_v9 = vmov 0.0  }
  0x4d   :  { %292 = vmatprep.subr.bf16.mxu0 %v291_v4  ;;  %v297_v15 = vpack.c.bf16 %v79_v11, %v77_v10  ;;  %v299_v16 = vpack.c.bf16 %v84_v14, %v82_v13  ;;  %v81_v17 = vld [vmem:[#allocation8 + $0x40] sm:$0xff]  ;;  %v83_v18 = vld [vmem:[#allocation8 + $0x50] sm:$0xff]  ;;  %v86_v19 = vld [vmem:[#allocation8 + $0x68] sm:$0xff]  ;;  %v604_v41 = vadd.s32 128, %v601_v40  ;;  %v101_v44 = vsub.s32 0, %v100_v43 }
  0x4e   :  { %294 = vmatpush1.bf16.msra.mxu0 %v293_v8  ;;  %v88_v20 = vld [vmem:[#allocation8 + $0x78] sm:$0xff]  ;;  %v301_v21 = vpack.c.bf16 %v83_v18, %v81_v17  ;;  %v85_v23 = vld [vmem:[#allocation8 + $0x60] sm:$0xff]  ;;  %v87_v24 = vld [vmem:[#allocation8 + $0x70] sm:$0xff]  ;;  %v105_v46 = vsub.s32 1, %v100_v43  ;;  %v488_v8 = vmov 0.0  }
  0x4f   :  { %296 = vmatprep.subr.bf16.mxu0 %v295_v12  ;;  %v303_v22 = vpack.c.bf16 %v88_v20, %v86_v19  ;;  %v90_v25 = vld [vmem:[#allocation8 + $0x88] sm:$0xff]  ;;  %v92_v26 = vld [vmem:[#allocation8 + $0x98] sm:$0xff]  ;;  %v305_v27 = vpack.c.bf16 %v87_v24, %v85_v23  ;;  %v89_v29 = vld [vmem:[#allocation8 + $0x80] sm:$0xff] }
  0x50   :  { %v307_v28 = vpack.c.bf16 %v92_v26, %v90_v25  ;;  %v91_v30 = vld [vmem:[#allocation8 + $0x90] sm:$0xff]  ;;  %v94_v31 = vld [vmem:[#allocation8 + $0xa8] sm:$0xff]  ;;  %v96_v32 = vld [vmem:[#allocation8 + $0xb8] sm:$0xff] }
  0x51   :  { %v309_v33 = vpack.c.bf16 %v91_v30, %v89_v29  ;;  %v311_v34 = vpack.c.bf16 %v96_v32, %v94_v31  ;;  %v93_v35 = vld [vmem:[#allocation8 + $0xa0] sm:$0xff]  ;;  %v95_v36 = vld [vmem:[#allocation8 + $0xb0] sm:$0xff]  ;;  %v72_v38 = vld [vmem:[#allocation2] sm:$0xff] }
  0x52   :  { %298 = vmatpush1.bf16.msra.mxu0 %v297_v15  ;;  %v313_v37 = vpack.c.bf16 %v95_v36, %v93_v35  ;;  %v97_v45 = vld [vmem:[%s646_s4] sm:$0x3]  ;;  %v207_v0 = vld [vmem:[#allocation5] sm:$0xff]  ;;  %s613_s4 = smov 0  }
  0x53   :  { %300 = vmatprep.subr.bf16.mxu0 %v299_v16  ;;  %v102_v47 = vrot.slane %v97_v45, %v101_v44  ;;  %v106_v48 = vrot.slane %v97_v45, %v105_v46 }
  0x56   :  { %302 = vmatpush1.bf16.msra.mxu0 %v301_v21 }
  0x57   :  { %304 = vmatprep.subr.bf16.mxu0 %v303_v22 }
  0x5a   :  { %306 = vmatpush1.bf16.msra.mxu0 %v305_v27 }
  0x5b   :  { %308 = vmatprep.subr.bf16.mxu0 %v307_v28 }
  0x5e   :  { %310 = vmatpush1.bf16.msra.mxu0 %v309_v33 }
  0x5f   :  { %312 = vmatprep.subr.bf16.mxu0 %v311_v34 }
  0x62   :  { %314 = vmatpush1.bf16.msra.mxu0 %v313_v37 }
  0x65   :  { %290 = vmatmul.mubr.msk.f32.vlgmr.msra.gmra.mrb[0].mxu0 %vm109_vm0, %v72_v38 }
 0x138   :  { %v179_v49 = vpop.f32.mrb[0].mxu0 }
 0x139   :  { %v180_v50 = vadd.f32 %v179_v49, %v102_v47  ;;  %v181_v51 = vpop.f32.mrb[1].mxu0 }
 0x13a   :  { %v182_v52 = vadd.f32 %v181_v51, %v106_v48 }
 0x13b   :  { %184 = vmax.xlane.f32.xlu0 %v180_v50 }
 0x13c   :  { %v194_v53 = vsub.f32 0.0, %v182_v52 }
 0x13e   :  { %v195_v54 = vmul.f32 1.442695, %v194_v53 }
 0x140   :  { %350 = vpow2.f32 %v195_v54 }
 0x14a   :  { %v351_v55 = vpop.eup %350 }
 0x14b   :  { %v197_v56 = vadd.f32 1.0, %v351_v55 }
 0x14d   :  { %352 = vrcp.f32 %v197_v56 }
 0x157   :  { %v609_v57 = vpop.eup %352 }
 0x158   :  { %v200_v58 = vsub.f32 1.0, %v609_v57 }
 0x15a   :  { %203 = vperm.xlu1 %348, %v200_v58  }
 0x15e   :  { %210 = vperm.xlu1 %348, %v609_v57  }
 0x1c8   :  { %v185_v59 = vpop.xlane.xlu0 %184 }
 0x1c9   :  { %v186_v60 = vsub.f32 %v180_v50, %v185_v59 }
 0x1cb   :  { %v187_v61 = vmul.f32 1.442695, %v186_v60 }
 0x1cd   :  { %354 = vpow2.f32 %v187_v61 }
 0x1d7   :  { %v355_v62 = vpop.eup %354 }
 0x1d8   :  { %189 = vadd.xlane.f32.xlu0 %v355_v62 }
 0x1d9   :  { %v204_v63 = vpop.permute.xlu1 %203 }
 0x1dd   :  { %v211_v2 = vpop.permute.xlu1 %210 }
 0x1de   :  { %v213_v3 = vmul.f32 %v211_v2, %v207_v0 }
 0x265   :  { %v190_v4 = vpop.xlane.xlu0 %189 }
 0x266   :  { %356 = vrcp.f32 %v190_v4 }
 0x270   :  { %v357_v5 = vpop.eup %356 }
 0x271   :  { %v193_v6 = vmul.f32 %v357_v5, %v355_v62 }
 0x273   :  { %v206_v7 = vmul.f32 %v204_v63, %v193_v6 }
 0x274 LB: > { %v226_v10 = vstv %s498_s4  ;;  %vm229_vm1 = vcmask 64512   ;;  %s223_s4 = sadd.s32 1, %s498_s4   ;;  %s498_s4 = sphi %s613_s4, %s223_s4   ;;  %v494_v9 = vphi %v492_v9, %v493_v9   ;;  %v490_v8 = vphi %v488_v8, %v489_v8  }
 0x275   : > { %vm227_vm2 = vcmp.eq.s32.totalorder %v601_v40, %v226_v10  ;;  %p220_p4 = scmp.ge.s32.totalorder %s223_s4, 8  }
 0x276   : > { %v228_v11 = vsel %vm227_vm2, %v599_v1, 0  ;;  %v243_v12 = vsel %vm227_vm2, %v213_v3, 0.0  ;;  %vm256_vm5 = vcmask (%p220_p4), 7168   ;;  %s508_s22 = smov (%p220_p4), [#allocation10]  }
 0x277   : > { %v230_v13 = vsel %vm229_vm1, %v228_v11, 0  ;;  %v244_v14 = vsel %vm229_vm1, %v243_v12, 0.0  ;;  %257 = vst.msk [vmem:[%s648_s6] sm:$0xff] (%p220_p4), %vm256_vm5, %v609_v57  ;;  %s264_s23 = sshll.u32 (%p220_p4), %s508_s22, 4  ;;  %s265_s23 = int_to_ptr.vmem [resolvable:$true] %s264_s23 }
 0x278   : > { %v232_v15 = vshrl.u32 %v230_v13, 16  ;;  %v231_v16 = vand.u32 65535, %v230_v13  ;;  %245 = vadd.xlane.f32.xlu1 %v244_v14  ;;  %s446_s25 = scalar_lea.vmem (%p220_p4), %s265_s23, 256  ;;  %p451_p6 = scmp.lt.s32.totalorder (%p220_p4), %s265_s23, %s265_s23 }
 0x279   :  { %p447_p5 = scmp.ne.s32.totalorder (%p220_p4), %s265_s23, %s446_s25  ;;  %p452_p7 = scmp.lt.s32.totalorder (%p220_p4), %s446_s25, %s446_s25 }
 0x27a   : > { %v234_v17 = vcvt.s32.f32 %v232_v15  ;;  %v233_v18 = vcvt.s32.f32 %v231_v16 }
 0x27b   :  { %p453_p8 = por (%p220_p4), %p452_p7, %p451_p6 }
 0x27c   : > { %237 = vadd.xlane.f32.xlu0 %v234_v17 }
 0x27d   :  { %p454_p9 = pnand (%p220_p4), %p453_p8, %p447_p5 }
 0x280   : > { %235 = vadd.xlane.f32.xlu0 %v233_v18 }
 0x305   : > { %v246_v25 = vpop.xlane.xlu1 %245 }
 0x309   : > { %v238_v19 = vpop.xlane.xlu0 %237 }
 0x30a   : > { %v240_v20 = vcvt.f32.s32 %v238_v19 }
 0x30c   : > { %v241_v22 = vshll.u32 %v240_v20, 16 }
 0x30d   : > { %v236_v21 = vpop.xlane.xlu0 %235 }
 0x30e   : > { %v239_v23 = vcvt.f32.s32 %v236_v21 }
 0x310   : > { %v242_v24 = vadd.s32 %v241_v22, %v239_v23  ;;  %222 = sbr.rel (!%p220_p4) target bundleno = 628 (0x274), region = 71 }
 0x312   : > { %vm247_vm3 = vcmp.eq.s32.totalorder %v601_v40, %v242_v24  ;;  %vm248_vm4 = vcmp.eq.s32.totalorder %v604_v41, %v242_v24 }
 0x313   : > { %v249_v26 = vsel %vm247_vm3, %v246_v25, 0.0  ;;  %v250_v27 = vsel %vm248_vm4, %v246_v25, 0.0 }
 0x314   : > { %v251_v28 = vadd.f32 %v494_v9, %v249_v26   ;;  %v252_v29 = vadd.f32 %v490_v8, %v250_v27  }
 0x316   : > { %v489_v8 = vmov %v252_v29   ;;  %v493_v9 = vmov %v251_v28   ;;  %v253_v30 = vadd.f32 (%p220_p4), %v251_v28, %v206_v7  ;;  %255 = vst [vmem:[#allocation10 + $0x8] sm:$0xff] (%p220_p4), %v252_v29 }
 0x318   :  { %254 = vst [vmem:[#allocation10] sm:$0xff] %v253_v30 }
 0x319   :  { %457 = shalt.err (!%p454_p9)
}
 0x31a   :  { %s458_s28 = scalar_lea.hbm %s647_s5, 256 }
 0x31b   :  { %p459_p10 = scmp.ne.s32.totalorder %s647_s5, %s458_s28  ;;  %p462_p11 = scmp.lt.u32.totalorder %s458_s28, %s647_s5 }
 0x31d   :  { %p464_p12 = pnand %p462_p11, %p459_p10 }
 0x31f   :  { %467 = shalt.err (!%p464_p12)
}
 0x320   :  { %267 = dma.vmem_to_hbm [thread:$0]  %s265_s23, 256, %s647_s5, [#allocation4]  }
 0x321   :  { %486 = dma.done.wait [#allocation4], 256  }
 0x322   :  { %487 = vsyncadd [#allocation4], 4294967040 }
 0x323   :  { %275 = vsyncpa [#allocation3], 1 }
 0x324   :  { %276 = vsyncpa [#allocation6], 1 }
 0x325   :  { %277 = vsyncpa [#allocation9], 1 }
 0x326   :  { %278 = vsyncpa [#allocation4], 1 }

</bundles_post_ra>
